<compile_context>
chip_gen: v5e
topology: v5e:2x2
jax: 0.10.0
libtpu: 0.0.40
codegen_flags: <defaults>
</compile_context>

<pallas_src>
import numpy as np
import jax
import jax.numpy as jnp
from jax.experimental import pallas as pl
from jax.experimental.pallas import tpu as pltpu


def _round_up(x, m):
    return (x + m - 1) // m * m


# --------------------------------------------------------------------------
# Weight pre-packing (outside the kernel): fused, transposed, bf16 blocks.
# --------------------------------------------------------------------------
def pack_decoder_params(codebook, w1_pt, b1, w2_pt, b2):
    """codebook (K,D); w1_pt (D,H,4) / w2_pt (H,C,4) in PyTorch (Cin,Cout,k) layout."""
    K, D = codebook.shape
    H = w1_pt.shape[1]
    C = w2_pt.shape[1]

    t1 = [w1_pt[:, :, k] for k in range(4)]        # (D, H) per tap
    t2 = [w2_pt[:, :, k] for k in range(4)]        # (H, C) per tap
    z_dh = jnp.zeros((D, H), jnp.float32)
    z_hc = jnp.zeros((H, C), jnp.float32)

    # Row blocks [zq ; zq_prev ; zq_next] -> column blocks [e | o]:
    #   e[j] = zq[j]@t1 + zq[j-1]@t3 ;  o[j] = zq[j]@t2 + zq[j+1]@t0
    w1_block = jnp.concatenate([
        jnp.concatenate([t1[1], t1[2]], axis=1),   # zq rows
        jnp.concatenate([t1[3], z_dh], axis=1),    # zq_prev rows
        jnp.concatenate([z_dh, t1[0]], axis=1),    # zq_next rows
    ], axis=0)                                     # (3D, 2H)

    # Row blocks [e ; o ; o_prev ; e_next] -> column blocks [p0 | p1 | p2 | p3]:
    #   p0 = e@V1 + o_prev@V3 ; p1 = o@V0 + e@V2 ; p2 = o@V1 + e@V3 ; p3 = e_next@V0 + o@V2
    w2_block = jnp.concatenate([
        jnp.concatenate([t2[1], t2[2], t2[3], z_hc], axis=1),   # e rows
        jnp.concatenate([z_hc, t2[0], t2[1], t2[2]], axis=1),   # o rows
        jnp.concatenate([t2[3], z_hc, z_hc, z_hc], axis=1),     # o_prev rows
        jnp.concatenate([z_hc, z_hc, z_hc, t2[0]], axis=1),     # e_next rows
    ], axis=0)                                     # (4H, 4C)

    return {
        # channel-major operands: output channels on sublanes, contraction on lanes
        "cb_t": jnp.asarray(codebook).T.astype(jnp.bfloat16),          # (D, K)
        "w1_t": w1_block.T.astype(jnp.bfloat16),                       # (2H, 3D)
        "b1_col": jnp.concatenate([b1, b1]).reshape(2 * H, 1).astype(jnp.float32),
        "w2_t": w2_block.T.astype(jnp.bfloat16),                       # (4C, 4H)
        "b2_col": jnp.tile(b2, 4).reshape(4 * C, 1).astype(jnp.float32),
        "dims": (K, D, H, C),
    }


# --------------------------------------------------------------------------
# Pallas kernel + wrapper
# --------------------------------------------------------------------------
def dna_vqvae_decode(indices, packed, tile_l=1024, out_dtype=jnp.float32):
    """indices: (B, L) int -> logits (B, Cout, 4L) in PyTorch NCL layout."""
    K, D, H, C = packed["dims"]
    B, L = indices.shape

    # Sequence tile (latent positions).  Lane-dense output blocks require
    # TL % 128 == 0 whenever the length is split into more than one tile.
    TL = min(tile_l, _round_up(L, 8))
    Lp = _round_up(L, TL)
    num_tiles = Lp // TL
    assert num_tiles == 1 or TL % 128 == 0
    TLW = TL + 4                       # halo window: 2 leading + 2 trailing cols

    # Sentinel-padded index row (lane-major), then pre-gather per-tile halo
    # windows so the kernel only ever does static slicing.  Sentinel value K
    # lies outside the codebook -> its one-hot column is all zeros, which
    # reproduces the transposed-conv zero padding of z_q.
    idx_flat = jnp.full((B, Lp + 8), K, dtype=jnp.int32)
    idx_flat = idx_flat.at[:, 2:2 + L].set(indices.astype(jnp.int32))
    win_idx = (jnp.arange(num_tiles, dtype=jnp.int32)[:, None] * TL
               + jnp.arange(TLW, dtype=jnp.int32)[None, :])          # (T, TLW)
    # window column r of tile t  <->  latent position g = t*TL - 2 + r
    idx_win = jnp.take(idx_flat, win_idx, axis=1)[:, :, None, :]     # (B, T, 1, TLW)

    cb_t = packed["cb_t"]
    w1_t = packed["w1_t"]
    b1_col = packed["b1_col"]
    w2_t = packed["w2_t"]
    b2_col = packed["b2_col"]

    def kernel(idx_ref, cb_ref, w1_ref, b1_ref, w2_ref, b2_ref, out_ref):
        start = pl.program_id(1) * TL            # latent offset of this tile

        # ---- codebook lookup: bf16 one-hot (exact) @ bf16 codebook^T, f32 acc
        idx_row = idx_ref[0, 0]                                      # (1, TLW)
        onehot = (jax.lax.broadcasted_iota(jnp.int32, (K, TLW), 0)
                  == idx_row).astype(jnp.bfloat16)                   # (K, TLW)
        zq = jnp.dot(cb_ref[...], onehot,
                     preferred_element_type=jnp.float32
                     ).astype(jnp.bfloat16)                          # (D, TLW)

        # ---- fused ConvTranspose1d #1: both output phases in one matmul ----
        # hidden column c in [0, TL+2)  <->  latent position g = start - 1 + c
        x1 = jnp.concatenate([zq[:, 1:TL + 3],       # zq[g]
                              zq[:, 0:TL + 2],       # zq[g-1]
                              zq[:, 2:TL + 4]],      # zq[g+1]
                             axis=0)                                  # (3D, TL+2)
        eo = jnp.dot(w1_ref[...], x1,
                     preferred_element_type=jnp.float32) + b1_ref[...]
        eo = jnp.maximum(eo, 0.0)                                     # ReLU
        # zero the hidden sequence outside [0, L): conv2's zero padding
        g = jax.lax.broadcasted_iota(jnp.int32, (1, TL + 2), 1) + (start - 1)
        eo = jnp.where((g >= 0) & (g < L), eo, 0.0).astype(jnp.bfloat16)

        # ---- fused ConvTranspose1d #2: all 4 output phases in one matmul ----
        e = eo[:H]
        o = eo[H:]
        x2 = jnp.concatenate([eo[:, 1:TL + 1],       # e[g], o[g]
                              o[:, 0:TL],            # o[g-1]
                              e[:, 2:TL + 2]],       # e[g+1]
                             axis=0)                                  # (4H, TL)
        y = jnp.dot(w2_ref[...], x2,
                    preferred_element_type=jnp.float32) + b2_ref[...]  # (4C, TL)

        # Lane-dense store; rows ordered phase*Cout + channel.
        out_ref[0] = y.astype(out_ref.dtype)

    flops = 2 * B * num_tiles * (D * K * TLW
                                 + 2 * H * 3 * D * (TL + 2)
                                 + 4 * C * 4 * H * TL)
    bytes_accessed = (B * num_tiles * TLW * 4
                      + (K * D + 2 * H * 3 * D + 4 * C * 4 * H) * 2
                      + (2 * H + 4 * C) * 4
                      + B * 4 * C * Lp * jnp.dtype(out_dtype).itemsize)

    out = pl.pallas_call(
        kernel,
        out_shape=jax.ShapeDtypeStruct((B, 4 * C, Lp), out_dtype),
        grid=(B, num_tiles),
        in_specs=[
            pl.BlockSpec((1, 1, 1, TLW), lambda b, t: (b, t, 0, 0)),   # index windows
            pl.BlockSpec((D, K), lambda b, t: (0, 0)),                 # codebook^T bf16
            pl.BlockSpec((2 * H, 3 * D), lambda b, t: (0, 0)),         # fused deconv1 W^T
            pl.BlockSpec((2 * H, 1), lambda b, t: (0, 0)),             # bias1 column
            pl.BlockSpec((4 * C, 4 * H), lambda b, t: (0, 0)),         # fused deconv2 W^T
            pl.BlockSpec((4 * C, 1), lambda b, t: (0, 0)),             # bias2 column
        ],
        out_specs=pl.BlockSpec((1, 4 * C, TL), lambda b, t: (b, 0, t)),
        compiler_params=pltpu.CompilerParams(
            dimension_semantics=("parallel", "parallel"),
            vmem_limit_bytes=32 * 1024 * 1024,
        ),
        cost_estimate=pl.CostEstimate(
            flops=flops, transcendentals=0, bytes_accessed=bytes_accessed),
    )(idx_win, cb_t, w1_t, b1_col, w2_t, b2_col)

    # Rows are ordered phase*Cout + c; interleave the 4 phases into the length
    # axis to recover PyTorch's (B, Cout, 4L).  (Kept as a wrapper pass; an
    # in-kernel stride-4 lane interleave would need lane scatters.)
    logits = (out.reshape(B, 4, C, Lp)
                 .transpose(0, 2, 3, 1)
                 .reshape(B, C, 4 * Lp)[:, :, : 4 * L])
    return logits


# --------------------------------------------------------------------------
# Pure-numpy reference (PyTorch ConvTranspose1d semantics)
# --------------------------------------------------------------------------
def _conv_transpose1d_ref(x, w, b, stride=2, padding=1):
    # x: (B, Cin, L), w: (Cin, Cout, K) [PyTorch layout], b: (Cout,)
    B, Cin, L = x.shape
    _, Cout, Kk = w.shape
    Lout = (L - 1) * stride - 2 * padding + Kk
    out = np.zeros((B, Cout, Lout), dtype=np.float64)
    for i in range(L):
        xi = x[:, :, i]
        for k in range(Kk):
            t = i * stride - padding + k
            if 0 <= t < Lout:
                out[:, :, t] += xi @ w[:, :, k]
    return out + b[None, :, None]


def _reference_decode(indices, cb, w1_pt, b1, w2_pt, b2, round_hidden_bf16=False):
    zq = cb[indices]                           # (B, L, D)
    zq = np.transpose(zq, (0, 2, 1))           # (B, D, L)
    h = np.maximum(_conv_transpose1d_ref(zq, w1_pt, b1), 0.0)
    if round_hidden_bf16:
        h = np.asarray(jnp.asarray(h, jnp.float32).astype(jnp.bfloat16)
                       .astype(jnp.float32))
    return _conv_transpose1d_ref(h, w2_pt, b2)


if __name__ == "__main__":
    # small, deterministic config
    B, L = 2, 8          # batch, latent sequence length
    K, D = 64, 32        # codebook size, embedding dim
    H = 32               # decoder hidden channels
    Cout = 4             # DNA alphabet (A, C, G, T)

    key = jax.random.PRNGKey(0)
    k_idx, k_cb, k_w1, k_b1, k_w2, k_b2, k_idx2 = jax.random.split(key, 7)

    indices = jax.random.randint(k_idx, (B, L), 0, K, dtype=jnp.int32)
    codebook = jax.random.normal(k_cb, (K, D), dtype=jnp.float32)
    # PyTorch ConvTranspose1d weight layout: (Cin, Cout, kernel)
    w1_pt = (0.1 * jax.random.normal(k_w1, (D, H, 4))).astype(jnp.float32)
    b1 = (0.01 * jax.random.normal(k_b1, (H,))).astype(jnp.float32)
    w2_pt = (0.1 * jax.random.normal(k_w2, (H, Cout, 4))).astype(jnp.float32)
    b2 = (0.01 * jax.random.normal(k_b2, (Cout,))).astype(jnp.float32)

    packed = pack_decoder_params(codebook, w1_pt, b1, w2_pt, b2)

    def _bf16_round(x):
        return np.asarray(jnp.asarray(x, jnp.float32).astype(jnp.bfloat16)
                          .astype(jnp.float32))

    # bf16-aware reference: the same operand rounding the kernel uses (bf16
    # codebook / weights / hidden activations), accumulated in float64.
    cb_bf = _bf16_round(codebook)
    w1_bf = _bf16_round(w1_pt)
    w2_bf = _bf16_round(w2_pt)
    b1_np, b2_np = np.asarray(b1), np.asarray(b2)

    # --- test 1: single-tile path (L = 8) ---
    y = jax.block_until_ready(dna_vqvae_decode(indices, packed))
    y_ref = _reference_decode(np.asarray(indices), cb_bf, w1_bf, b1_np, w2_bf,
                              b2_np, round_hidden_bf16=True)
    assert y.shape == (B, Cout, 4 * L), y.shape
    assert np.allclose(np.asarray(y), y_ref, atol=1e-2, rtol=1e-2), (
        np.abs(np.asarray(y) - y_ref).max())

    # sanity vs. the pure-f32 reference (bf16 operand rounding is the only diff)
    y_ref32 = _reference_decode(np.asarray(indices), np.asarray(codebook),
                                np.asarray(w1_pt), b1_np, np.asarray(w2_pt), b2_np)
    assert np.allclose(np.asarray(y), y_ref32, atol=5e-2, rtol=5e-2), (
        np.abs(np.asarray(y) - y_ref32).max())

    # --- test 2: multi-tile path with halo across the tile boundary ---
    L2 = 192
    indices2 = jax.random.randint(k_idx2, (B, L2), 0, K, dtype=jnp.int32)
    y2 = jax.block_until_ready(dna_vqvae_decode(indices2, packed, tile_l=128))
    y2_ref = _reference_decode(np.asarray(indices2), cb_bf, w1_bf, b1_np, w2_bf,
                               b2_np, round_hidden_bf16=True)
    assert y2.shape == (B, Cout, 4 * L2), y2.shape
    assert np.allclose(np.asarray(y2), y2_ref, atol=1e-2, rtol=1e-2), (
        np.abs(np.asarray(y2) - y2_ref).max())

    print("KERNEL_OK")
</pallas_src>

<mosaic_0001>
module attributes {stable_mosaic.version = 11 : i64} {
  func.func @kernel(%arg0: i32, %arg1: i32, %arg2: memref<1x1x1x12xi32, #tpu.memory_space<vmem>>, %arg3: memref<32x64xbf16, #tpu.memory_space<vmem>>, %arg4: memref<64x96xbf16, #tpu.memory_space<vmem>>, %arg5: memref<64x1xf32, #tpu.memory_space<vmem>>, %arg6: memref<16x128xbf16, #tpu.memory_space<vmem>>, %arg7: memref<16x1xf32, #tpu.memory_space<vmem>>, %arg8: memref<1x16x8xf32, #tpu.memory_space<vmem>>) attributes {dimension_semantics = [#tpu.dimension_semantics<parallel>, #tpu.dimension_semantics<parallel>], iteration_bounds = array<i64: 2, 1>, scalar_prefetch = 0 : i64, scratch_operands = 0 : i64, tpu.core_type = #tpu.core_type<tc>, window_params = [{transform_indices = @transform_0, window_bounds = array<i64: 1, 1, 1, 12>}, {pipeline_mode = #tpu.pipeline_mode<synchronous>, transform_indices = @transform_1, window_bounds = array<i64: 32, 64>}, {pipeline_mode = #tpu.pipeline_mode<synchronous>, transform_indices = @transform_2, window_bounds = array<i64: 64, 96>}, {pipeline_mode = #tpu.pipeline_mode<synchronous>, transform_indices = @transform_3, window_bounds = array<i64: 64, 1>}, {pipeline_mode = #tpu.pipeline_mode<synchronous>, transform_indices = @transform_4, window_bounds = array<i64: 16, 128>}, {pipeline_mode = #tpu.pipeline_mode<synchronous>, transform_indices = @transform_5, window_bounds = array<i64: 16, 1>}, {transform_indices = @transform_6, window_bounds = array<i64: 1, 16, 8>}]} {
    %c8_i32 = arith.constant 8 : i32
    %0 = arith.muli %arg1, %c8_i32 : i32
    %c0 = arith.constant 0 : index
    %c0_0 = arith.constant 0 : index
    %c0_1 = arith.constant 0 : index
    %c0_2 = arith.constant 0 : index
    %1 = vector.load %arg2[%c0, %c0_0, %c0_1, %c0_2] : memref<1x1x1x12xi32, #tpu.memory_space<vmem>>, vector<1x1x1x12xi32>
    %2 = vector.shape_cast %1 : vector<1x1x1x12xi32> to vector<1x12xi32>
    %3 = tpu.iota {dimensions = array<i32: 0>} : vector<64x12xi32>
    %4 = vector.broadcast %2 : vector<1x12xi32> to vector<64x12xi32>
    %5 = arith.cmpi eq, %3, %4 : vector<64x12xi32>
    %6 = arith.extui %5 : vector<64x12xi1> to vector<64x12xi32>
    %7 = arith.sitofp %6 : vector<64x12xi32> to vector<64x12xf32>
    %8 = arith.truncf %7 : vector<64x12xf32> to vector<64x12xbf16>
    %c0_3 = arith.constant 0 : index
    %c0_4 = arith.constant 0 : index
    %9 = vector.load %arg3[%c0_3, %c0_4] : memref<32x64xbf16, #tpu.memory_space<vmem>>, vector<32x64xbf16>
    %cst = arith.constant dense<0.000000e+00> : vector<32x12xf32>
    %10 = tpu.matmul %9, %8, %cst {dimension_numbers = #tpu.dot_dimension_numbers<[1], [0], [0], [1], [0, 0, 1, 1], [], []>} : vector<32x64xbf16>, vector<64x12xbf16>, vector<32x12xf32> -> vector<32x12xf32>
    %11 = arith.truncf %10 : vector<32x12xf32> to vector<32x12xbf16>
    %12 = vector.extract_strided_slice %11 {offsets = [0, 1], sizes = [32, 10], strides = [1, 1]} : vector<32x12xbf16> to vector<32x10xbf16>
    %13 = vector.extract_strided_slice %11 {offsets = [0, 0], sizes = [32, 10], strides = [1, 1]} : vector<32x12xbf16> to vector<32x10xbf16>
    %14 = vector.extract_strided_slice %11 {offsets = [0, 2], sizes = [32, 10], strides = [1, 1]} : vector<32x12xbf16> to vector<32x10xbf16>
    %15 = tpu.concatenate %12, %13, %14 in 0 : vector<32x10xbf16>, vector<32x10xbf16>, vector<32x10xbf16> -> vector<96x10xbf16>
    %c0_5 = arith.constant 0 : index
    %c0_6 = arith.constant 0 : index
    %16 = vector.load %arg4[%c0_5, %c0_6] : memref<64x96xbf16, #tpu.memory_space<vmem>>, vector<64x96xbf16>
    %cst_7 = arith.constant dense<0.000000e+00> : vector<64x10xf32>
    %17 = tpu.matmul %16, %15, %cst_7 {dimension_numbers = #tpu.dot_dimension_numbers<[1], [0], [0], [1], [0, 0, 1, 1], [], []>} : vector<64x96xbf16>, vector<96x10xbf16>, vector<64x10xf32> -> vector<64x10xf32>
    %c0_8 = arith.constant 0 : index
    %c0_9 = arith.constant 0 : index
    %18 = vector.load %arg5[%c0_8, %c0_9] : memref<64x1xf32, #tpu.memory_space<vmem>>, vector<64x1xf32>
    %19 = vector.broadcast %18 : vector<64x1xf32> to vector<64x10xf32>
    %20 = arith.addf %17, %19 : vector<64x10xf32>
    %cst_10 = arith.constant 0.000000e+00 : f32
    %21 = vector.broadcast %cst_10 : f32 to vector<64x10xf32>
    %22 = arith.maximumf %20, %21 : vector<64x10xf32>
    %23 = tpu.iota {dimensions = array<i32: 1>} : vector<1x10xi32>
    %c1_i32 = arith.constant 1 : i32
    %24 = arith.subi %0, %c1_i32 : i32
    %25 = vector.broadcast %24 : i32 to vector<1x10xi32>
    %26 = arith.addi %23, %25 : vector<1x10xi32>
    %c0_i32 = arith.constant 0 : i32
    %27 = vector.broadcast %c0_i32 : i32 to vector<1x10xi32>
    %28 = arith.cmpi sge, %26, %27 : vector<1x10xi32>
    %c8_i32_11 = arith.constant 8 : i32
    %29 = vector.broadcast %c8_i32_11 : i32 to vector<1x10xi32>
    %30 = arith.cmpi slt, %26, %29 : vector<1x10xi32>
    %31 = arith.andi %28, %30 : vector<1x10xi1>
    %cst_12 = arith.constant 0.000000e+00 : f32
    %32 = vector.shape_cast %31 : vector<1x10xi1> to vector<1x10xi1>
    %33 = vector.broadcast %32 : vector<1x10xi1> to vector<64x10xi1>
    %34 = vector.broadcast %cst_12 : f32 to vector<64x10xf32>
    %35 = arith.select %33, %22, %34 : vector<64x10xi1>, vector<64x10xf32>
    %36 = arith.truncf %35 : vector<64x10xf32> to vector<64x10xbf16>
    %37 = vector.extract_strided_slice %36 {offsets = [0, 0], sizes = [32, 10], strides = [1, 1]} : vector<64x10xbf16> to vector<32x10xbf16>
    %38 = vector.extract_strided_slice %36 {offsets = [32, 0], sizes = [32, 10], strides = [1, 1]} : vector<64x10xbf16> to vector<32x10xbf16>
    %39 = vector.extract_strided_slice %36 {offsets = [0, 1], sizes = [64, 8], strides = [1, 1]} : vector<64x10xbf16> to vector<64x8xbf16>
    %40 = vector.extract_strided_slice %38 {offsets = [0, 0], sizes = [32, 8], strides = [1, 1]} : vector<32x10xbf16> to vector<32x8xbf16>
    %41 = vector.extract_strided_slice %37 {offsets = [0, 2], sizes = [32, 8], strides = [1, 1]} : vector<32x10xbf16> to vector<32x8xbf16>
    %42 = tpu.concatenate %39, %40, %41 in 0 : vector<64x8xbf16>, vector<32x8xbf16>, vector<32x8xbf16> -> vector<128x8xbf16>
    %c0_13 = arith.constant 0 : index
    %c0_14 = arith.constant 0 : index
    %43 = vector.load %arg6[%c0_13, %c0_14] : memref<16x128xbf16, #tpu.memory_space<vmem>>, vector<16x128xbf16>
    %cst_15 = arith.constant dense<0.000000e+00> : vector<16x8xf32>
    %44 = tpu.matmul %43, %42, %cst_15 {dimension_numbers = #tpu.dot_dimension_numbers<[1], [0], [0], [1], [0, 0, 1, 1], [], []>} : vector<16x128xbf16>, vector<128x8xbf16>, vector<16x8xf32> -> vector<16x8xf32>
    %c0_16 = arith.constant 0 : index
    %c0_17 = arith.constant 0 : index
    %45 = vector.load %arg7[%c0_16, %c0_17] : memref<16x1xf32, #tpu.memory_space<vmem>>, vector<16x1xf32>
    %46 = vector.broadcast %45 : vector<16x1xf32> to vector<16x8xf32>
    %47 = arith.addf %44, %46 : vector<16x8xf32>
    %c0_18 = arith.constant 0 : index
    %c0_19 = arith.constant 0 : index
    %c0_20 = arith.constant 0 : index
    %48 = vector.load %arg8[%c0_18, %c0_19, %c0_20] : memref<1x16x8xf32, #tpu.memory_space<vmem>>, vector<1x16x8xf32>
    %49 = vector.shape_cast %48 : vector<1x16x8xf32> to vector<16x8xf32>
    %50 = vector.shape_cast %47 : vector<16x8xf32> to vector<1x16x8xf32>
    tpu.vector_store %arg8[%c0_18, %c0_19, %c0_20], %50 {strides = array<i32>} : memref<1x16x8xf32, #tpu.memory_space<vmem>>, vector<1x16x8xf32>,
    return
  }
  func.func @transform_0(%arg0: i32, %arg1: i32) -> (i32, i32, i32, i32) {
    %c0_i32 = arith.constant 0 : i32
    %c0_i32_0 = arith.constant 0 : i32
    %c0_i32_1 = arith.constant 0 : i32
    return %arg0, %arg1, %c0_i32, %c0_i32_0 : i32, i32, i32, i32
  }
  func.func @transform_1(%arg0: i32, %arg1: i32) -> (i32, i32) {
    %c0_i32 = arith.constant 0 : i32
    %c0_i32_0 = arith.constant 0 : i32
    %c0_i32_1 = arith.constant 0 : i32
    return %c0_i32, %c0_i32_0 : i32, i32
  }
  func.func @transform_2(%arg0: i32, %arg1: i32) -> (i32, i32) {
    %c0_i32 = arith.constant 0 : i32
    %c0_i32_0 = arith.constant 0 : i32
    %c0_i32_1 = arith.constant 0 : i32
    return %c0_i32, %c0_i32_0 : i32, i32
  }
  func.func @transform_3(%arg0: i32, %arg1: i32) -> (i32, i32) {
    %c0_i32 = arith.constant 0 : i32
    %c0_i32_0 = arith.constant 0 : i32
    %c0_i32_1 = arith.constant 0 : i32
    return %c0_i32, %c0_i32_0 : i32, i32
  }
  func.func @transform_4(%arg0: i32, %arg1: i32) -> (i32, i32) {
    %c0_i32 = arith.constant 0 : i32
    %c0_i32_0 = arith.constant 0 : i32
    %c0_i32_1 = arith.constant 0 : i32
    return %c0_i32, %c0_i32_0 : i32, i32
  }
  func.func @transform_5(%arg0: i32, %arg1: i32) -> (i32, i32) {
    %c0_i32 = arith.constant 0 : i32
    %c0_i32_0 = arith.constant 0 : i32
    %c0_i32_1 = arith.constant 0 : i32
    return %c0_i32, %c0_i32_0 : i32, i32
  }
  func.func @transform_6(%arg0: i32, %arg1: i32) -> (i32, i32, i32) {
    %c0_i32 = arith.constant 0 : i32
    %c0_i32_0 = arith.constant 0 : i32
    return %arg0, %c0_i32, %arg1 : i32, i32, i32
  }
}

</mosaic_0001>

<bundles_post_ra>
// kernel: tpu_custom_call.1
= control target key start
LH: loop header
LB: loop body
LE: loop exit
PB: predicated region body
PF: predicated region fallthrough
CT: control target
= control target key end

     0   :  { %s876_s21 = smov 0   ;;  %s878_s22 = smov 0   ;;  %s1004_s0 = inlined_call_operand.vmem [shape: s32[2,1,1,12], index: 0, kind: input, shape index: {}]   ;;  %s1005_s1 = inlined_call_operand.vmem [shape: bf16[32,64], index: 1, kind: input, shape index: {}]   ;;  %s1006_s2 = inlined_call_operand.vmem [shape: bf16[64,96], index: 2, kind: input, shape index: {}]   ;;  %s1007_s3 = inlined_call_operand.vmem [shape: f32[64,1], index: 3, kind: input, shape index: {}]   ;;  %s1008_s4 = inlined_call_operand.vmem [shape: bf16[16,128], index: 4, kind: input, shape index: {}]   ;;  %s1009_s5 = inlined_call_operand.vmem [shape: f32[16,1], index: 5, kind: input, shape index: {}]   ;;  %s1010_s6 = inlined_call_operand.vmem [shape: f32[2,16,8], index: 6, kind: output, shape index: {}]  }
   0x1   :  { %s880_s23 = smov 0  }
   0x2 LB: > { %s28_s24 = sadd.s32 1, %s831_s22  ;;  %p712_p0 = scmp.ge.s32.totalorder %s835_s23, 1  ;;  %s835_s23 = sphi %s880_s23, %s16_s23   ;;  %s831_s22 = sphi %s878_s22, %s1014_s22   ;;  %s827_s21 = sphi %s876_s21, %s1013_s21  }
   0x3   : > { %p30_p1 = scmp.ge.s32.totalorder %s28_s24, 2  ;;  %p229_p2 = scmp.lt.s32.totalorder %s835_s23, 3 }
   0x5   : > { %s1016_s24 = smov (%p30_p1, %s28_s24), 0  ;;  %p230_p3 = pnand %p712_p0, %p229_p2 }
   0x6   : > { %p263_p4 = scmp.lt.s32.totalorder (!%p230_p3), %s827_s21, 1  ;;  %s838_s8 = smov (!%p230_p3), 1  }
   0x7   : > { %233 = sbr.rel (%p230_p3) target bundleno = 985 (0x3d9), region = 44  ;;  %s839_s9 = smov (!%p230_p3), 127  }
   0xc   : > { %v280_v0 = vlaneseq  ;;  %s1018_s21 = smov (!%p263_p4, %s827_s21), 1  ;;  %v837_v9 = vmov 1.0|1.0   ;;  %v768_v11 = vld [vmem:[%s1005_s1] sm:$0xff]  ;;  %vm332_vm12 = vcmask 523264   ;;  %v769_v12 = vld [vmem:[%s1005_s1 + $0x8] sm:$0xff] }
   0xd   : > { %s268_s27 = scalar_lea.vmem %s1004_s0, %s1018_s21  ;;  %v388_v33 = vld [vmem:[%s1007_s3] sm:$0xff]  ;;  %v391_v34 = vld [vmem:[%s1007_s3 + $0x18] sm:$0xff]  ;;  %v840_v35 = vmov 0   ;;  %v394_v36 = vld [vmem:[%s1007_s3 + $0x30] sm:$0xff]  ;;  %vm470_vm13 = vcmask 785408  }
   0xe   : > { %v281_v1 = vshrl.u32 %v280_v0, 7  ;;  %v812_v6 = vld [vmem:[%s268_s27] ss:$0 sm:$0xff]  ;;  %811 = vset.pattern.permute.xlu1 %v840_v35  ;;  %810 = vset.pattern.permute.xlu0 %v840_v35  ;;  %v393_v38 = vld [vmem:[%s1007_s3 + $0x28] sm:$0xff]  ;;  %v390_v39 = vld [vmem:[%s1007_s3 + $0x10] sm:$0xff]  ;;  %v521_v48 = vand.u32 127, %v280_v0 }
   0xf   : > { %809 = vset.pattern.permute.xlu2 %v840_v35  ;;  %v392_v40 = vld [vmem:[%s1007_s3 + $0x20] sm:$0xff]  ;;  %v389_v42 = vld [vmem:[%s1007_s3 + $0x8] sm:$0xff]  ;;  %v772_v44 = vld [vmem:[%s1006_s2 + $0x10] sm:$0xff] }
  0x10   : > { %v287_v2 = vadd.s32 48, %v281_v1  ;;  %v288_v3 = vadd.s32 56, %v281_v1  ;;  %v285_v4 = vadd.s32 32, %v281_v1  ;;  %v286_v5 = vadd.s32 40, %v281_v1  ;;  %v770_v43 = vld [vmem:[%s1006_s2] sm:$0xff]  ;;  %v395_v45 = vld [vmem:[%s1007_s3 + $0x38] sm:$0xff] }
  0x11   : > { %v283_v7 = vadd.s32 16, %v281_v1  ;;  %v284_v8 = vadd.s32 24, %v281_v1  ;;  %v282_v10 = vadd.s32 8, %v281_v1  ;;  %vm290_vm9 = vcmp.eq.s32.totalorder %v281_v1, %v812_v6  ;;  %v771_v46 = vld [vmem:[%s1006_s2 + $0x8] sm:$0xff]  ;;  %v773_v47 = vld [vmem:[%s1006_s2 + $0x18] sm:$0xff] }
  0x12   : > { %vm296_vm0 = vcmp.eq.s32.totalorder %v287_v2, %v812_v6  ;;  %vm297_vm1 = vcmp.eq.s32.totalorder %v288_v3, %v812_v6  ;;  %vm294_vm2 = vcmp.eq.s32.totalorder %v285_v4, %v812_v6  ;;  %vm295_vm3 = vcmp.eq.s32.totalorder %v286_v5, %v812_v6 }
  0x13   : > { %vm731_vm4 = vmpackc.low %vm297_vm1, %vm296_vm0  ;;  %vm292_vm6 = vcmp.eq.s32.totalorder %v283_v7, %v812_v6  ;;  %vm293_vm7 = vcmp.eq.s32.totalorder %v284_v8, %v812_v6  ;;  %vm291_vm10 = vcmp.eq.s32.totalorder %v282_v10, %v812_v6  ;;  %v524_v50 = vadd.s32 4294967295, %v521_v48 }
  0x14   : > { %732 = vmatpush.bf16.msk.msra.mxu0 %vm731_vm4, %v837_v9  ;;  %vm733_vm5 = vmpackc.low %vm295_vm3, %vm294_vm2  ;;  %vm628_vm1 = vcmask 64512  }
  0x15   : > { %vm735_vm8 = vmpackc.low %vm293_vm7, %vm292_vm6  ;;  %vm525_vm14 = vcmp.ge.s32.totalorder %v524_v50, 0  ;;  %vm526_vm15 = vcmp.lt.s32.totalorder %v524_v50, 8  ;;  %v576_v50 = vld [vmem:[%s1009_s5] sm:$0xff] }
  0x16   : > { %vm737_vm11 = vmpackc.low %vm291_vm10, %vm290_vm9 }
  0x17   : > { %vm952_vm0 = vmand %vm525_vm14, %vm526_vm15 }
  0x18   : > { %734 = vmatpush.bf16.msk.msra.mxu0 %vm733_vm5, %v837_v9 }
  0x1c   : > { %736 = vmatpush.bf16.msk.msra.mxu0 %vm735_vm8, %v837_v9 }
  0x20   : > { %738 = vmatpush.bf16.msk.msra.mxu0 %vm737_vm11, %v837_v9 }
  0x23   : > { %739 = vmatmul.msk.bf16.vlgmr.msra.gmra.mxu0 %vm332_vm12, %v768_v11 }
  0x33   : > { %740 = vmatmul.msk.bf16.gmra.mxu0 %vm332_vm12, %v769_v12 }
  0xa0   : > { %v348_v13 = vpop.f32.mrf.mxu0 }
  0xa1   : > { %v358_v23 = vpack.c.bf16 %v348_v13, %v348_v13 }
  0xa3   : > { %v366_v25 = vunpack.c.l.b16 %v358_v23 }
  0xa8   : > { %v350_v14 = vpop.f32.mrf.mxu0 }
  0xa9   : > { %v359_v21 = vpack.c.bf16 %v350_v14, %v350_v14 }
  0xab   : > { %v367_v24 = vunpack.c.l.b16 %v359_v21 }
  0xad   : > { %v370_v26 = vpack.c.b16 %v367_v24, %v366_v25 }
  0xb0   : > { %v353_v15 = vpop.f32.mrf.mxu0 }
  0xb1   : > { %v360_v16 = vpack.c.bf16 %v353_v15, %v353_v15 }
  0xb3   : > { %v368_v19 = vunpack.c.l.b16 %v360_v16 }
  0xb8   : > { %v355_v17 = vpop.f32.mrf.mxu0 }
  0xb9   : > { %v361_v18 = vpack.c.bf16 %v355_v17, %v355_v17 }
  0xbb   : > { %v369_v20 = vunpack.c.l.b16 %v361_v18 }
  0xbd   : > { %v371_v22 = vpack.c.b16 %v369_v20, %v368_v19 }
  0xbf   : > { %374 = vrot.lane.b32.xlu1 %v371_v22, %s838_s8  ;;  %378 = vrot.lane.b32.xlu0 %v371_v22, %s839_s9 }
  0xc7   : > { %372 = vrot.lane.b32.xlu1 %v370_v26, %s838_s8  ;;  %376 = vrot.lane.b32.xlu0 %v370_v26, %s839_s9 }
 0x131   : > { %v375_v27 = vpop.permute.xlu1 %374  ;;  %v379_v28 = vpop.permute.xlu0 %378 }
 0x132   : > { %458 = vrot.lane.b32.xlu0 %v375_v27, %s839_s9  ;;  %462 = vrot.lane.b32.xlu2 %v379_v28, %s839_s9 }
 0x139   : > { %v373_v29 = vpop.permute.xlu1 %372  ;;  %v377_v30 = vpop.permute.xlu0 %376 }
 0x13a   : > { %456 = vrot.lane.b32.xlu1 %v373_v29, %s839_s9  ;;  %460 = vrot.lane.b32.xlu2 %v377_v30, %s839_s9 }
 0x13b   : > { %413 = vperm.xlu0 %810, %v391_v34  }
 0x142   : > { %398 = vperm.xlu1 %811, %v388_v33   ;;  %408 = vperm.xlu2 %809, %v390_v39  }
 0x143   : > { %418 = vperm.xlu0 %810, %v392_v40  }
 0x14a   : > { %428 = vperm.xlu1 %811, %v394_v36   ;;  %403 = vperm.xlu2 %809, %v389_v42  }
 0x152   : > { %423 = vperm.xlu1 %811, %v393_v38   ;;  %433 = vperm.xlu2 %809, %v395_v45  }
 0x18c   : > { %v463_v31 = vpop.permute.xlu2 %462 }
 0x18d   : > { %485 = vmatpush.bf16.msra.mxu1 %v463_v31  ;;  %775 = vmatpush.bf16.msra.mxu3 %v463_v31 }
 0x194   : > { %v461_v32 = vpop.permute.xlu2 %460 }
 0x195   : > { %486 = vmatpush.bf16.msra.mxu1 %v461_v32  ;;  %776 = vmatpush.bf16.msra.mxu3 %v461_v32 }
 0x19c   : > { %v409_v49 = vpop.permute.xlu2 %408 }
 0x1a4   : > { %v459_v37 = vpop.permute.xlu0 %458  ;;  %v404_v57 = vpop.permute.xlu2 %403 }
 0x1a5   : > { %487 = vmatpush.bf16.msra.mxu1 %v459_v37  ;;  %777 = vmatpush.bf16.msra.mxu3 %v459_v37 }
 0x1ac   : > { %v457_v41 = vpop.permute.xlu1 %456  ;;  %v434_v25 = vpop.permute.xlu2 %433 }
 0x1ad   : > { %488 = vmatpush.bf16.msra.mxu1 %v457_v41  ;;  %778 = vmatpush.bf16.msra.mxu3 %v457_v41  ;;  %v414_v0 = vpop.permute.xlu0 %413 }
 0x1b1   : > { %489 = vmatpush.bf16.msra.mxu1 %v379_v28  ;;  %779 = vmatpush.bf16.msra.mxu3 %v379_v28 }
 0x1b4   : > { %v399_v51 = vpop.permute.xlu1 %398 }
 0x1b5   : > { %490 = vmatpush.bf16.msra.mxu1 %v377_v30  ;;  %780 = vmatpush.bf16.msra.mxu3 %v377_v30  ;;  %v419_v11 = vpop.permute.xlu0 %418 }
 0x1b8   : > { %757 = vmatmul.msk.bf16.vlgmr.msra.gmra.mxu1 %vm470_vm13, %v770_v43  ;;  %759 = vmatmul.msk.bf16.vlgmr.msra.gmra.mxu3 %vm470_vm13, %v772_v44 }
 0x1bc   : > { %v429_v61 = vpop.permute.xlu1 %428 }
 0x1c4   : > { %v424_v9 = vpop.permute.xlu1 %423 }
 0x1c8   : > { %758 = vmatmul.msk.bf16.gmra.mxu1 %vm470_vm13, %v771_v46  ;;  %760 = vmatmul.msk.bf16.gmra.mxu3 %vm470_vm13, %v773_v47 }
 0x235   : > { %v492_v52 = vpop.f32.mrf.mxu1 }
 0x236   : > { %v493_v53 = vadd.f32 %v492_v52, %v399_v51  ;;  %v577_v51 = vld [vmem:[%s1009_s5 + $0x8] sm:$0xff] }
 0x238   : > { %v512_v54 = vmax.f32 %v493_v53, 0.0 }
 0x23a   : > { %v530_v59 = vsel %vm952_vm0, %v512_v54, 0.0 }
 0x23b   : > { %v502_v56 = vpop.f32.mrf.mxu3  ;;  %v538_v63 = vpack.c.bf16 %v530_v59, %v530_v59  ;;  %v774_v59 = vld [vmem:[%s1008_s4] sm:$0xff] }
 0x23c   : > { %v503_v16 = vadd.f32 %v502_v56, %v419_v11 }
 0x23d   : > { %v494_v58 = vpop.f32.mrf.mxu1  ;;  %v554_v4 = vunpack.c.l.b16 %v538_v63 }
 0x23e   : > { %v495_v60 = vadd.f32 %v494_v58, %v404_v57  ;;  %v516_v23 = vmax.f32 %v503_v16, 0.0 }
 0x240   : > { %v513_v62 = vmax.f32 %v495_v60, 0.0  ;;  %v534_v33 = vsel %vm952_vm0, %v516_v23, 0.0 }
 0x241   : > { %v542_v39 = vpack.c.bf16 %v534_v33, %v534_v33 }
 0x242   : > { %v531_v1 = vsel %vm952_vm0, %v513_v62, 0.0 }
 0x243   : > { %v539_v2 = vpack.c.bf16 %v531_v1, %v531_v1  ;;  %v504_v3 = vpop.f32.mrf.mxu3  ;;  %v558_v44 = vunpack.c.l.b16 %v542_v39 }
 0x244   : > { %v505_v13 = vadd.f32 %v504_v3, %v424_v9 }
 0x245   : > { %v555_v5 = vunpack.c.l.b16 %v539_v2  ;;  %v497_v6 = vpop.f32.mrf.mxu1 }
 0x246   : > { %v498_v7 = vadd.f32 %v497_v6, %v409_v49  ;;  %v517_v19 = vmax.f32 %v505_v13, 0.0 }
 0x247   : > { %v562_v8 = vpack.c.b16 %v555_v5, %v554_v4 }
 0x248   : > { %v514_v10 = vmax.f32 %v498_v7, 0.0  ;;  %v535_v28 = vsel %vm952_vm0, %v517_v19, 0.0 }
 0x249   : > { %570 = vrot.lane.b32.xlu0 %v562_v8, %s839_s9  ;;  %v543_v35 = vpack.c.bf16 %v535_v28, %v535_v28 }
 0x24a   : > { %v532_v17 = vsel %vm952_vm0, %v514_v10, 0.0 }
 0x24b   : > { %v507_v12 = vpop.f32.mrf.mxu3  ;;  %v540_v22 = vpack.c.bf16 %v532_v17, %v532_v17  ;;  %v559_v41 = vunpack.c.l.b16 %v543_v35 }
 0x24c   : > { %v508_v14 = vadd.f32 %v507_v12, %v429_v61 }
 0x24d   : > { %v499_v15 = vpop.f32.mrf.mxu1  ;;  %v556_v31 = vunpack.c.l.b16 %v540_v22  ;;  %v564_v46 = vpack.c.b16 %v559_v41, %v558_v44 }
 0x24e   : > { %v500_v18 = vadd.f32 %v499_v15, %v414_v0  ;;  %v518_v20 = vmax.f32 %v508_v14, 0.0 }
 0x250   : > { %v515_v21 = vmax.f32 %v500_v18, 0.0  ;;  %v536_v29 = vsel %vm952_vm0, %v518_v20, 0.0 }
 0x251   : > { %v544_v36 = vpack.c.bf16 %v536_v29, %v536_v29 }
 0x252   : > { %v533_v24 = vsel %vm952_vm0, %v515_v21, 0.0 }
 0x253   : > { %v541_v26 = vpack.c.bf16 %v533_v24, %v533_v24  ;;  %v509_v27 = vpop.f32.mrf.mxu3  ;;  %v560_v42 = vunpack.c.l.b16 %v544_v36 }
 0x254   : > { %v510_v30 = vadd.f32 %v509_v27, %v434_v25 }
 0x255   : > { %v557_v32 = vunpack.c.l.b16 %v541_v26 }
 0x256   : > { %v519_v34 = vmax.f32 %v510_v30, 0.0 }
 0x257   : > { %v563_v37 = vpack.c.b16 %v557_v32, %v556_v31 }
 0x258   : > { %v537_v38 = vsel %vm952_vm0, %v519_v34, 0.0 }
 0x259   : > { %v545_v40 = vpack.c.bf16 %v537_v38, %v537_v38  ;;  %572 = vrot.lane.b32.xlu2 %v563_v37, %s839_s9 }
 0x25b   : > { %v561_v43 = vunpack.c.l.b16 %v545_v40 }
 0x25d   : > { %v565_v45 = vpack.c.b16 %v561_v43, %v560_v42 }
 0x25f   : > { %568 = vrot.lane.b32.xlu1 %v565_v45, %s838_s8 }
 0x261   : > { %566 = vrot.lane.b32.xlu2 %v564_v46, %s838_s8 }
 0x2b3   : > { %v573_v47 = vpop.permute.xlu2 %572 }
 0x2b4   : > { %604 = vrot.lane.b32.xlu0 %v573_v47, %s839_s9 }
 0x2bb   : > { %v571_v48 = vpop.permute.xlu0 %570  ;;  %v567_v49 = vpop.permute.xlu2 %566 }
 0x2bc   : > { %602 = vrot.lane.b32.xlu1 %v571_v48, %s839_s9  ;;  %598 = vrot.lane.b32.xlu0 %v567_v49, %s839_s9 }
 0x2c4   : > { %596 = vrot.lane.b32.xlu1 %v565_v45, %s839_s9  ;;  %580 = vperm.xlu0 %810, %v576_v50  }
 0x2cc   : > { %585 = vperm.xlu1 %811, %v577_v51  }
 0x2d1   : > { %v569_v52 = vpop.permute.xlu1 %568 }
 0x2d2   : > { %600 = vrot.lane.b32.xlu2 %v569_v52, %s839_s9 }
 0x2da   : > { %594 = vrot.lane.b32.xlu2 %v564_v46, %s839_s9  ;;  %s767_s9 = sshll.u32 %s1018_s21, 4 }
 0x2db   : > { %s276_s27 = scalar_lea.vmem %s1010_s6, %s767_s9 }
 0x326   : > { %v605_v53 = vpop.permute.xlu0 %604 }
 0x327   : > { %614 = vmatpush.bf16.msra.mxu2 %v605_v53 }
 0x32c   : > { %v601_v55 = vpop.permute.xlu2 %600 }
 0x32e   : > { %v603_v54 = vpop.permute.xlu1 %602  ;;  %v599_v56 = vpop.permute.xlu0 %598 }
 0x32f   : > { %615 = vmatpush.bf16.msra.mxu2 %v603_v54 }
 0x333   : > { %616 = vmatpush.bf16.msra.mxu2 %v601_v55 }
 0x334   : > { %v595_v58 = vpop.permute.xlu2 %594 }
 0x336   : > { %v597_v57 = vpop.permute.xlu1 %596  ;;  %v581_v60 = vpop.permute.xlu0 %580 }
 0x337   : > { %617 = vmatpush.bf16.msra.mxu2 %v599_v56 }
 0x33b   : > { %618 = vmatpush.bf16.msra.mxu2 %v597_v57 }
 0x33e   : > { %v586_v63 = vpop.permute.xlu1 %585 }
 0x33f   : > { %619 = vmatpush.bf16.msra.mxu2 %v595_v58 }
 0x343   : > { %620 = vmatpush.bf16.msra.mxu2 %v573_v47 }
 0x347   : > { %621 = vmatpush.bf16.msra.mxu2 %v571_v48 }
 0x34a   : > { %622 = vmatmul.bf16.vlgmr.msra.gmra.mxu2 %v774_v59 }
 0x3cd   : > { %v623_v61 = vpop.f32.mrf.mxu2 }
 0x3ce   : > { %v624_v62 = vadd.f32 %v623_v61, %v581_v60 }
 0x3d0   : > { %629 = vst.msk [vmem:[%s276_s27] sm:$0xff] %vm628_vm1, %v624_v62 }
 0x3d5   : > { %v625_v0 = vpop.f32.mrf.mxu2 }
 0x3d6   : > { %v626_v1 = vadd.f32 %v625_v0, %v586_v63 }
 0x3d8   : > { %630 = vst.msk [vmem:[%s276_s27 + $0x8] sm:$0xff] %vm628_vm1, %v626_v1 }
 0x3d9 PF: > { %s16_s23 = sadd.s32 1, %s835_s23   ;;  %s1013_s21 = smov %s831_s22 }
 0x3da   : > { %p13_p5 = scmp.ge.s32.totalorder %s16_s23, 4   ;;  %s1014_s22 = smov %s1016_s24 }
 0x3dc   :  { %15 = sbr.rel (!%p13_p5) target bundleno = 2 (0x2), region = 74 }

</bundles_post_ra>
